<compile_context>
chip_gen: v6e
topology: v6e:2x2x1
jax: 0.10.0
libtpu: 0.0.40
codegen_flags: <defaults>
</compile_context>

<pallas_src>
import functools
import math

import jax
import jax.numpy as jnp
from jax.experimental import pallas as pl
from jax.experimental.pallas import tpu as pltpu

_VMEM_LIMIT = 32 * 1024 * 1024  # well under v7x's 64 MiB physical VMEM


def _round_up(x, m):
    return ((x + m - 1) // m) * m


# ------------------------------ Pallas kernel -------------------------------
def _highway_kernel(x_ref, wt_ref, bt_ref, wg_ref, bg_ref, o_ref, *, num_layers):
    """Fused multi-layer highway block on one (tm, H) row tile.

    Per layer:   t = relu(x @ Wt + bt)
                 g = sigmoid(x @ Wg + bg)
                 x = g * t + (1 - g) * x
    Matmuls run on the MXU with bf16 inputs / f32 accumulation; the gating and
    residual epilogue stays in f32.  All layers are applied while the row tile
    is resident in VMEM.
    """
    x = x_ref[...].astype(jnp.float32)
    for l in range(num_layers):                      # static unroll (L is tiny)
        xb = x.astype(jnp.bfloat16)
        t = jnp.dot(xb, wt_ref[l], preferred_element_type=jnp.float32) + bt_ref[l]
        g = jnp.dot(xb, wg_ref[l], preferred_element_type=jnp.float32) + bg_ref[l]
        t = jnp.maximum(t, 0.0)
        g = jax.nn.sigmoid(g)
        x = g * t + (1.0 - g) * x
    o_ref[...] = x.astype(o_ref.dtype)


@functools.lru_cache(maxsize=None)
def _highway_fn(M, H, L, tm):
    """Build (and cache) the pallas_call for padded row count M, hidden H."""
    assert M % tm == 0
    kernel = functools.partial(_highway_kernel, num_layers=L)
    flops = L * (2 * 2 * M * H * H + 6 * M * H)          # 2 matmuls + epilogue
    bytes_accessed = (4 * M * H * 2                       # x in + out (f32)
                      + 2 * 2 * L * H * H                 # bf16 weights
                      + 2 * 4 * L * H)                    # f32 biases
    cost = pl.CostEstimate(flops=flops,
                           transcendentals=L * M * H,     # sigmoid exp
                           bytes_accessed=bytes_accessed)
    return jax.jit(pl.pallas_call(
        kernel,
        out_shape=jax.ShapeDtypeStruct((M, H), jnp.float32),
        grid=(M // tm,),
        in_specs=[
            pl.BlockSpec((tm, H), lambda i: (i, 0)),        # x row tile
            pl.BlockSpec((L, H, H), lambda i: (0, 0, 0)),   # Wt (all layers)
            pl.BlockSpec((L, 1, H), lambda i: (0, 0, 0)),   # bt
            pl.BlockSpec((L, H, H), lambda i: (0, 0, 0)),   # Wg (all layers)
            pl.BlockSpec((L, 1, H), lambda i: (0, 0, 0)),   # bg
        ],
        out_specs=pl.BlockSpec((tm, H), lambda i: (i, 0)),
        compiler_params=pltpu.CompilerParams(
            dimension_semantics=("parallel",),   # shard row tiles across v7x TCs
            vmem_limit_bytes=_VMEM_LIMIT),
        cost_estimate=cost,
    ))


# --------------------------------- Wrapper -----------------------------------
def highway_encoder_forward(x, params, *, tm=512):
    """Equivalent of HighwayEncoder.forward for x of shape (..., hidden_size)."""
    wt, bt, wg, bg = params["wt"], params["bt"], params["wg"], params["bg"]
    L, H, _ = wt.shape
    orig_shape = x.shape
    x2 = x.reshape(-1, H).astype(jnp.float32)
    M = x2.shape[0]
    tm_eff = min(tm, _round_up(M, 8))          # row tile: <=512, multiple of 8
    Mp = _round_up(M, tm_eff)
    if Mp != M:
        x2 = jnp.pad(x2, ((0, Mp - M), (0, 0)))
    out = _highway_fn(Mp, H, L, tm_eff)(x2, wt, bt, wg, bg)
    if Mp != M:
        out = out[:M]
    return out.reshape(orig_shape)


# ----------------------------- Parameter setup -------------------------------
def make_highway_params(num_layers, hidden_size, key):
    """nn.Linear-style init: U(-1/sqrt(H), 1/sqrt(H)) for weights and biases.

    Weights are stored pre-transposed as (in, out) and cast to bf16 for the
    MXU; biases stay f32 (added after f32 accumulation).
    """
    bound = 1.0 / math.sqrt(hidden_size)
    keys = jax.random.split(key, 4 * num_layers)
    wt, bt, wg, bg = [], [], [], []
    for l in range(num_layers):
        k0, k1, k2, k3 = keys[4 * l:4 * l + 4]
        wt.append(jax.random.uniform(k0, (hidden_size, hidden_size),
                                     jnp.float32, -bound, bound))
        bt.append(jax.random.uniform(k1, (1, hidden_size),
                                     jnp.float32, -bound, bound))
        wg.append(jax.random.uniform(k2, (hidden_size, hidden_size),
                                     jnp.float32, -bound, bound))
        bg.append(jax.random.uniform(k3, (1, hidden_size),
                                     jnp.float32, -bound, bound))
    return {
        "wt": jnp.stack(wt).astype(jnp.bfloat16),
        "bt": jnp.stack(bt),
        "wg": jnp.stack(wg).astype(jnp.bfloat16),
        "bg": jnp.stack(bg),
    }


# ------------------------------ Pure-JAX reference ---------------------------
def highway_reference(x, params):
    wt = params["wt"].astype(jnp.float32)
    wg = params["wg"].astype(jnp.float32)
    bt, bg = params["bt"], params["bg"]
    L, H, _ = wt.shape
    orig_shape = x.shape
    h = x.reshape(-1, H).astype(jnp.float32)
    for l in range(L):
        t = jax.nn.relu(h @ wt[l] + bt[l])
        g = jax.nn.sigmoid(h @ wg[l] + bg[l])
        h = g * t + (1.0 - g) * h
    return h.reshape(orig_shape)


if __name__ == "__main__":
    num_layers, hidden_size = 2, 128
    batch, seq = 2, 8
    params = make_highway_params(num_layers, hidden_size, jax.random.PRNGKey(1))
    x = jax.random.normal(jax.random.PRNGKey(0), (batch, seq, hidden_size),
                          jnp.float32)
    out = highway_encoder_forward(x, params)
    out = jax.block_until_ready(out)
    assert out.shape == (batch, seq, hidden_size), out.shape
    assert bool(jnp.all(jnp.isfinite(out)))
    ref = highway_reference(x, params)
    assert bool(jnp.allclose(out, ref, atol=5e-2, rtol=5e-2)), \
        float(jnp.max(jnp.abs(out - ref)))
    print("KERNEL_OK")
</pallas_src>

<mosaic_0001>
module attributes {stable_mosaic.version = 11 : i64} {
  func.func @_highway_kernel(%arg0: i32, %arg1: memref<16x128xf32, #tpu.memory_space<vmem>>, %arg2: memref<2x128x128xbf16, #tpu.memory_space<vmem>>, %arg3: memref<2x1x128xf32, #tpu.memory_space<vmem>>, %arg4: memref<2x128x128xbf16, #tpu.memory_space<vmem>>, %arg5: memref<2x1x128xf32, #tpu.memory_space<vmem>>, %arg6: memref<16x128xf32, #tpu.memory_space<vmem>>) attributes {dimension_semantics = [#tpu.dimension_semantics<parallel>], iteration_bounds = array<i64: 1>, scalar_prefetch = 0 : i64, scratch_operands = 0 : i64, tpu.core_type = #tpu.core_type<tc>, window_params = [{transform_indices = @transform_0, window_bounds = array<i64: 16, 128>}, {pipeline_mode = #tpu.pipeline_mode<synchronous>, transform_indices = @transform_1, window_bounds = array<i64: 2, 128, 128>}, {pipeline_mode = #tpu.pipeline_mode<synchronous>, transform_indices = @transform_2, window_bounds = array<i64: 2, 1, 128>}, {pipeline_mode = #tpu.pipeline_mode<synchronous>, transform_indices = @transform_3, window_bounds = array<i64: 2, 128, 128>}, {pipeline_mode = #tpu.pipeline_mode<synchronous>, transform_indices = @transform_4, window_bounds = array<i64: 2, 1, 128>}, {transform_indices = @transform_5, window_bounds = array<i64: 16, 128>}]} {
    %c0 = arith.constant 0 : index
    %c0_0 = arith.constant 0 : index
    %0 = vector.load %arg1[%c0, %c0_0] : memref<16x128xf32, #tpu.memory_space<vmem>>, vector<16x128xf32>
    %1 = arith.truncf %0 : vector<16x128xf32> to vector<16x128xbf16>
    %c0_1 = arith.constant 0 : index
    %c0_2 = arith.constant 0 : index
    %c0_3 = arith.constant 0 : index
    %2 = vector.load %arg2[%c0_1, %c0_2, %c0_3] : memref<2x128x128xbf16, #tpu.memory_space<vmem>>, vector<1x128x128xbf16>
    %3 = vector.shape_cast %2 : vector<1x128x128xbf16> to vector<128x128xbf16>
    %cst = arith.constant dense<0.000000e+00> : vector<16x128xf32>
    %4 = tpu.matmul %1, %3, %cst {dimension_numbers = #tpu.dot_dimension_numbers<[1], [0], [0], [1], [0, 0, 1, 1], [], []>} : vector<16x128xbf16>, vector<128x128xbf16>, vector<16x128xf32> -> vector<16x128xf32>
    %c0_4 = arith.constant 0 : index
    %c0_5 = arith.constant 0 : index
    %c0_6 = arith.constant 0 : index
    %5 = vector.load %arg3[%c0_4, %c0_5, %c0_6] : memref<2x1x128xf32, #tpu.memory_space<vmem>>, vector<1x1x128xf32>
    %6 = vector.shape_cast %5 : vector<1x1x128xf32> to vector<1x128xf32>
    %7 = vector.broadcast %6 : vector<1x128xf32> to vector<16x128xf32>
    %8 = arith.addf %4, %7 : vector<16x128xf32>
    %c0_7 = arith.constant 0 : index
    %c0_8 = arith.constant 0 : index
    %c0_9 = arith.constant 0 : index
    %9 = vector.load %arg4[%c0_7, %c0_8, %c0_9] : memref<2x128x128xbf16, #tpu.memory_space<vmem>>, vector<1x128x128xbf16>
    %10 = vector.shape_cast %9 : vector<1x128x128xbf16> to vector<128x128xbf16>
    %cst_10 = arith.constant dense<0.000000e+00> : vector<16x128xf32>
    %11 = tpu.matmul %1, %10, %cst_10 {dimension_numbers = #tpu.dot_dimension_numbers<[1], [0], [0], [1], [0, 0, 1, 1], [], []>} : vector<16x128xbf16>, vector<128x128xbf16>, vector<16x128xf32> -> vector<16x128xf32>
    %c0_11 = arith.constant 0 : index
    %c0_12 = arith.constant 0 : index
    %c0_13 = arith.constant 0 : index
    %12 = vector.load %arg5[%c0_11, %c0_12, %c0_13] : memref<2x1x128xf32, #tpu.memory_space<vmem>>, vector<1x1x128xf32>
    %13 = vector.shape_cast %12 : vector<1x1x128xf32> to vector<1x128xf32>
    %14 = vector.broadcast %13 : vector<1x128xf32> to vector<16x128xf32>
    %15 = arith.addf %11, %14 : vector<16x128xf32>
    %cst_14 = arith.constant 0.000000e+00 : f32
    %16 = vector.broadcast %cst_14 : f32 to vector<16x128xf32>
    %17 = arith.maximumf %8, %16 : vector<16x128xf32>
    %18 = arith.negf %15 : vector<16x128xf32>
    %19 = math.exp %18 : vector<16x128xf32>
    %cst_15 = arith.constant 1.000000e+00 : f32
    %20 = vector.broadcast %cst_15 : f32 to vector<16x128xf32>
    %21 = arith.addf %20, %19 : vector<16x128xf32>
    %22 = arith.divf %20, %21 : vector<16x128xf32>
    %23 = arith.mulf %22, %17 : vector<16x128xf32>
    %cst_16 = arith.constant 1.000000e+00 : f32
    %24 = vector.broadcast %cst_16 : f32 to vector<16x128xf32>
    %25 = arith.subf %24, %22 : vector<16x128xf32>
    %26 = arith.mulf %25, %0 : vector<16x128xf32>
    %27 = arith.addf %23, %26 : vector<16x128xf32>
    %28 = arith.truncf %27 : vector<16x128xf32> to vector<16x128xbf16>
    %c1 = arith.constant 1 : index
    %c0_17 = arith.constant 0 : index
    %c0_18 = arith.constant 0 : index
    %29 = vector.load %arg2[%c1, %c0_17, %c0_18] : memref<2x128x128xbf16, #tpu.memory_space<vmem>>, vector<1x128x128xbf16>
    %30 = vector.shape_cast %29 : vector<1x128x128xbf16> to vector<128x128xbf16>
    %cst_19 = arith.constant dense<0.000000e+00> : vector<16x128xf32>
    %31 = tpu.matmul %28, %30, %cst_19 {dimension_numbers = #tpu.dot_dimension_numbers<[1], [0], [0], [1], [0, 0, 1, 1], [], []>} : vector<16x128xbf16>, vector<128x128xbf16>, vector<16x128xf32> -> vector<16x128xf32>
    %c1_20 = arith.constant 1 : index
    %c0_21 = arith.constant 0 : index
    %c0_22 = arith.constant 0 : index
    %32 = vector.load %arg3[%c1_20, %c0_21, %c0_22] : memref<2x1x128xf32, #tpu.memory_space<vmem>>, vector<1x1x128xf32>
    %33 = vector.shape_cast %32 : vector<1x1x128xf32> to vector<1x128xf32>
    %34 = vector.broadcast %33 : vector<1x128xf32> to vector<16x128xf32>
    %35 = arith.addf %31, %34 : vector<16x128xf32>
    %c1_23 = arith.constant 1 : index
    %c0_24 = arith.constant 0 : index
    %c0_25 = arith.constant 0 : index
    %36 = vector.load %arg4[%c1_23, %c0_24, %c0_25] : memref<2x128x128xbf16, #tpu.memory_space<vmem>>, vector<1x128x128xbf16>
    %37 = vector.shape_cast %36 : vector<1x128x128xbf16> to vector<128x128xbf16>
    %cst_26 = arith.constant dense<0.000000e+00> : vector<16x128xf32>
    %38 = tpu.matmul %28, %37, %cst_26 {dimension_numbers = #tpu.dot_dimension_numbers<[1], [0], [0], [1], [0, 0, 1, 1], [], []>} : vector<16x128xbf16>, vector<128x128xbf16>, vector<16x128xf32> -> vector<16x128xf32>
    %c1_27 = arith.constant 1 : index
    %c0_28 = arith.constant 0 : index
    %c0_29 = arith.constant 0 : index
    %39 = vector.load %arg5[%c1_27, %c0_28, %c0_29] : memref<2x1x128xf32, #tpu.memory_space<vmem>>, vector<1x1x128xf32>
    %40 = vector.shape_cast %39 : vector<1x1x128xf32> to vector<1x128xf32>
    %41 = vector.broadcast %40 : vector<1x128xf32> to vector<16x128xf32>
    %42 = arith.addf %38, %41 : vector<16x128xf32>
    %cst_30 = arith.constant 0.000000e+00 : f32
    %43 = vector.broadcast %cst_30 : f32 to vector<16x128xf32>
    %44 = arith.maximumf %35, %43 : vector<16x128xf32>
    %45 = arith.negf %42 : vector<16x128xf32>
    %46 = math.exp %45 : vector<16x128xf32>
    %cst_31 = arith.constant 1.000000e+00 : f32
    %47 = vector.broadcast %cst_31 : f32 to vector<16x128xf32>
    %48 = arith.addf %47, %46 : vector<16x128xf32>
    %49 = arith.divf %47, %48 : vector<16x128xf32>
    %50 = arith.mulf %49, %44 : vector<16x128xf32>
    %cst_32 = arith.constant 1.000000e+00 : f32
    %51 = vector.broadcast %cst_32 : f32 to vector<16x128xf32>
    %52 = arith.subf %51, %49 : vector<16x128xf32>
    %53 = arith.mulf %52, %27 : vector<16x128xf32>
    %54 = arith.addf %50, %53 : vector<16x128xf32>
    %c0_33 = arith.constant 0 : index
    %c0_34 = arith.constant 0 : index
    %55 = vector.load %arg6[%c0_33, %c0_34] : memref<16x128xf32, #tpu.memory_space<vmem>>, vector<16x128xf32>
    tpu.vector_store %arg6[%c0_33, %c0_34], %54 {strides = array<i32>} : memref<16x128xf32, #tpu.memory_space<vmem>>, vector<16x128xf32>,
    return
  }
  func.func @transform_0(%arg0: i32) -> (i32, i32) {
    %c0_i32 = arith.constant 0 : i32
    %c0_i32_0 = arith.constant 0 : i32
    return %arg0, %c0_i32 : i32, i32
  }
  func.func @transform_1(%arg0: i32) -> (i32, i32, i32) {
    %c0_i32 = arith.constant 0 : i32
    %c0_i32_0 = arith.constant 0 : i32
    %c0_i32_1 = arith.constant 0 : i32
    %c0_i32_2 = arith.constant 0 : i32
    return %c0_i32, %c0_i32_0, %c0_i32_1 : i32, i32, i32
  }
  func.func @transform_2(%arg0: i32) -> (i32, i32, i32) {
    %c0_i32 = arith.constant 0 : i32
    %c0_i32_0 = arith.constant 0 : i32
    %c0_i32_1 = arith.constant 0 : i32
    %c0_i32_2 = arith.constant 0 : i32
    return %c0_i32, %c0_i32_0, %c0_i32_1 : i32, i32, i32
  }
  func.func @transform_3(%arg0: i32) -> (i32, i32, i32) {
    %c0_i32 = arith.constant 0 : i32
    %c0_i32_0 = arith.constant 0 : i32
    %c0_i32_1 = arith.constant 0 : i32
    %c0_i32_2 = arith.constant 0 : i32
    return %c0_i32, %c0_i32_0, %c0_i32_1 : i32, i32, i32
  }
  func.func @transform_4(%arg0: i32) -> (i32, i32, i32) {
    %c0_i32 = arith.constant 0 : i32
    %c0_i32_0 = arith.constant 0 : i32
    %c0_i32_1 = arith.constant 0 : i32
    %c0_i32_2 = arith.constant 0 : i32
    return %c0_i32, %c0_i32_0, %c0_i32_1 : i32, i32, i32
  }
  func.func @transform_5(%arg0: i32) -> (i32, i32) {
    %c0_i32 = arith.constant 0 : i32
    %c0_i32_0 = arith.constant 0 : i32
    return %arg0, %c0_i32 : i32, i32
  }
}

</mosaic_0001>

<bundles_post_ra>
// kernel: tpu_custom_call.1
= control target key start
LH: loop header
LB: loop body
LE: loop exit
PB: predicated region body
PF: predicated region fallthrough
CT: control target
= control target key end

     0   :  { %10 = vsyncpa [#allocation3], 0  ;;  %s1003_s0 = inlined_call_operand.hbm [shape: f32[16,128], index: 0, kind: input, shape index: {}]   ;;  %s1004_s1 = inlined_call_operand.hbm [shape: bf16[2,128,128], index: 1, kind: input, shape index: {}]   ;;  %s1005_s2 = inlined_call_operand.vmem [shape: f32[2,1,128], index: 2, kind: input, shape index: {}]   ;;  %s1006_s3 = inlined_call_operand.hbm [shape: bf16[2,128,128], index: 3, kind: input, shape index: {}]   ;;  %s1007_s4 = inlined_call_operand.vmem [shape: f32[2,1,128], index: 4, kind: input, shape index: {}]   ;;  %s1008_s5 = inlined_call_operand.hbm [shape: f32[16,128], index: 5, kind: output, shape index: {}]  }
   0x1   :  { %11 = vsyncpa [#allocation6], 0 }
   0x2   :  { %12 = vsyncpa [#allocation4], 0  ;;  %s885_s18 = smov [#allocation5]  }
   0x3   :  { %s30_s19 = sshll.u32 %s885_s18, 4  ;;  %s31_s19 = int_to_ptr.vmem [resolvable:$true] %s30_s19 }
   0x4   :  { %s807_s20 = scalar_lea.vmem %s31_s19, 2048  ;;  %p812_p1 = scmp.lt.s32.totalorder %s31_s19, %s31_s19 }
   0x5   :  { %p808_p0 = scmp.ne.s32.totalorder %s31_s19, %s807_s20  ;;  %p813_p2 = scmp.lt.s32.totalorder %s807_s20, %s807_s20 }
   0x7   :  { %p814_p3 = por %p813_p2, %p812_p1 }
   0x9   :  { %p815_p4 = pnand %p814_p3, %p808_p0 }
   0xb   :  { %818 = shalt.err (!%p815_p4)
}
   0xc   :  { %s886_s21 = smov 64   ;;  %s887_s22 = smov 4  }
   0xd   :  { %36 = dma.hbm_to_vmem [thread:$0]  %s1004_s1, 2048, %s31_s19, [#allocation6], %s886_s21, %s886_s21, %s887_s22  }
   0xe   :  { %s888_s25 = smov [#allocation2]  }
   0xf   :  { %s18_s26 = sshll.u32 %s888_s25, 4  ;;  %s19_s26 = int_to_ptr.vmem [resolvable:$true] %s18_s26 }
  0x10   :  { %s827_s27 = scalar_lea.vmem %s19_s26, 256  ;;  %p832_p6 = scmp.lt.s32.totalorder %s19_s26, %s19_s26 }
  0x11   :  { %p828_p5 = scmp.ne.s32.totalorder %s19_s26, %s827_s27  ;;  %p833_p7 = scmp.lt.s32.totalorder %s827_s27, %s827_s27 }
  0x13   :  { %p834_p8 = por %p833_p7, %p832_p6 }
  0x15   :  { %p835_p9 = pnand %p834_p8, %p828_p5 }
  0x17   :  { %838 = shalt.err (!%p835_p9)
}
  0x18   :  { %s889_s28 = smov 128   ;;  %s890_s29 = smov 8  }
  0x19   :  { %24 = dma.hbm_to_vmem [thread:$0]  %s1003_s0, 256, %s19_s26, [#allocation3], %s889_s28, %s889_s28, %s890_s29  }
  0x1a   :  { %s891_s1 = smov [#allocation7]  }
  0x1b   :  { %s44_s7 = sshll.u32 %s891_s1, 4  ;;  %s45_s7 = int_to_ptr.vmem [resolvable:$true] %s44_s7 }
  0x1c   :  { %s847_s8 = scalar_lea.vmem %s45_s7, 2048  ;;  %p852_p11 = scmp.lt.s32.totalorder %s45_s7, %s45_s7 }
  0x1d   :  { %p848_p10 = scmp.ne.s32.totalorder %s45_s7, %s847_s8  ;;  %p853_p12 = scmp.lt.s32.totalorder %s847_s8, %s847_s8 }
  0x1f   :  { %p854_p13 = por %p853_p12, %p852_p11 }
  0x21   :  { %p855_p0 = pnand %p854_p13, %p848_p10 }
  0x23   :  { %858 = shalt.err (!%p855_p0)
}
  0x24   :  { %50 = dma.hbm_to_vmem [thread:$0]  %s1006_s3, 2048, %s45_s7, [#allocation6], %s886_s21, %s886_s21, %s887_s22  }
  0x25   :  { %879 = dma.done.wait [#allocation3], 256  }
  0x26   :  { %880 = vsyncadd [#allocation3], 4294967040 }
  0x27   :  { %881 = dma.done.wait [#allocation6], 4096  }
  0x28   :  { %882 = vsyncadd [#allocation6], 4294963200  ;;  %v892_v0 = vmov 0.0   ;;  %vm893_vm0 = vmmov 0   ;;  %v751_v1 = vld [vmem:[#allocation7 + $0x38] sm:$0xff]   ;;  %v752_v2 = vld [vmem:[#allocation7 + $0x30] sm:$0xff]  }
  0x29   :  { %681 = vmatprep.subr.bf16.mxu1 %v892_v0  ;;  %661 = vmatprep.subr.bf16.mxu0 %v892_v0  ;;  %v753_v3 = vld [vmem:[#allocation7 + $0x28] sm:$0xff]   ;;  %v758_v4 = vld [vmem:[#allocation5 + $0x38] sm:$0xff]   ;;  %v760_v5 = vld [vmem:[#allocation5 + $0x30] sm:$0xff]   ;;  %s894_s16 = smov [#allocation8]  }
  0x2a   :  { %697 = vmatprep.mubr.msk.bf16.mxu1 %vm893_vm0, %v892_v0  ;;  %677 = vmatprep.mubr.msk.bf16.mxu0 %vm893_vm0, %v892_v0  ;;  %v754_v6 = vld [vmem:[#allocation7 + $0x20] sm:$0xff]   ;;  %v761_v7 = vld [vmem:[#allocation5 + $0x28] sm:$0xff]   ;;  %v755_v8 = vld [vmem:[#allocation7 + $0x18] sm:$0xff]   ;;  %s570_s17 = sshll.u32 %s894_s16, 4  ;;  %s571_s17 = int_to_ptr.vmem [resolvable:$true] %s570_s17 }
  0x2b   :  { %682 = vmatpush3.bf16.msra.mxu1 %v751_v1  ;;  %662 = vmatpush3.bf16.msra.mxu0 %v758_v4  ;;  %v756_v9 = vld [vmem:[#allocation7 + $0x10] sm:$0xff]   ;;  %v762_v10 = vld [vmem:[#allocation5 + $0x20] sm:$0xff]   ;;  %v763_v11 = vld [vmem:[#allocation5 + $0x18] sm:$0xff]   ;;  %p864_p2 = scmp.lt.s32.totalorder %s571_s17, %s571_s17 }
  0x2c   :  { %683 = vmatprep.subr.bf16.mxu1 %v892_v0  ;;  %663 = vmatprep.subr.bf16.mxu0 %v892_v0  ;;  %v757_v12 = vld [vmem:[#allocation7 + $0x8] sm:$0xff]   ;;  %v764_v13 = vld [vmem:[#allocation5 + $0x10] sm:$0xff]   ;;  %v759_v14 = vld [vmem:[#allocation7] sm:$0xff]  }
  0x2d   :  { %v953_v15 = vld [vmem:[#allocation2] sm:$0xff]  ;;  %v955_v16 = vld [vmem:[#allocation2 + $0x8] sm:$0xff]  ;;  %v765_v18 = vld [vmem:[#allocation5 + $0x8] sm:$0xff]  }
  0x2e   :  { %v65_v17 = vpack.c.bf16 %v955_v16, %v953_v15  ;;  %v766_v19 = vld [vmem:[#allocation5] sm:$0xff]   ;;  %v767_v20 = vld [vmem:[#allocation5 + $0x78] sm:$0xff]   ;;  %v769_v22 = vld [vmem:[#allocation5 + $0x70] sm:$0xff]  }
  0x2f   :  { %684 = vmatpush3.bf16.msra.mxu1 %v752_v2  ;;  %664 = vmatpush3.bf16.msra.mxu0 %v760_v5  ;;  %v768_v21 = vld [vmem:[#allocation7 + $0x78] sm:$0xff]   ;;  %v770_v23 = vld [vmem:[#allocation7 + $0x70] sm:$0xff]   ;;  %v771_v24 = vld [vmem:[#allocation5 + $0x68] sm:$0xff]  }
  0x30   :  { %685 = vmatprep.subr.bf16.mxu1 %v892_v0  ;;  %665 = vmatprep.subr.bf16.mxu0 %v892_v0  ;;  %v772_v25 = vld [vmem:[#allocation7 + $0x68] sm:$0xff]   ;;  %v773_v26 = vld [vmem:[#allocation5 + $0x60] sm:$0xff]   ;;  %v775_v28 = vld [vmem:[#allocation5 + $0x58] sm:$0xff]  }
  0x31   :  { %v774_v27 = vld [vmem:[#allocation7 + $0x60] sm:$0xff]   ;;  %v776_v29 = vld [vmem:[#allocation7 + $0x58] sm:$0xff]   ;;  %v777_v30 = vld [vmem:[#allocation5 + $0x50] sm:$0xff]  }
  0x32   :  { %v778_v31 = vld [vmem:[#allocation7 + $0x50] sm:$0xff]   ;;  %v779_v32 = vld [vmem:[#allocation5 + $0x48] sm:$0xff]   ;;  %v781_v34 = vld [vmem:[#allocation5 + $0x40] sm:$0xff]  }
  0x33   :  { %686 = vmatpush3.bf16.msra.mxu1 %v753_v3  ;;  %666 = vmatpush3.bf16.msra.mxu0 %v761_v7  ;;  %v780_v33 = vld [vmem:[#allocation7 + $0x48] sm:$0xff]   ;;  %v782_v35 = vld [vmem:[#allocation7 + $0x40] sm:$0xff]   ;;  %v592_v36 = vld [vmem:[%s1007_s4] ss:$0 sm:$0xff] }
  0x34   :  { %687 = vmatprep.subr.bf16.mxu1 %v892_v0  ;;  %667 = vmatprep.subr.bf16.mxu0 %v892_v0  ;;  %v583_v53 = vld [vmem:[%s1005_s2] ss:$0 sm:$0xff]  ;;  %v614_v5 = vld [vmem:[%s1007_s4 + $0x1] ss:$0 sm:$0xff] }
  0x37   :  { %688 = vmatpush3.bf16.msra.mxu1 %v754_v6  ;;  %668 = vmatpush3.bf16.msra.mxu0 %v762_v10 }
  0x38   :  { %689 = vmatprep.subr.bf16.mxu1 %v892_v0  ;;  %669 = vmatprep.subr.bf16.mxu0 %v892_v0 }
  0x3b   :  { %690 = vmatpush3.bf16.msra.mxu1 %v755_v8  ;;  %670 = vmatpush3.bf16.msra.mxu0 %v763_v11 }
  0x3c   :  { %691 = vmatprep.subr.bf16.mxu1 %v892_v0  ;;  %671 = vmatprep.subr.bf16.mxu0 %v892_v0 }
  0x3f   :  { %692 = vmatpush3.bf16.msra.mxu1 %v756_v9  ;;  %672 = vmatpush3.bf16.msra.mxu0 %v764_v13 }
  0x40   :  { %693 = vmatprep.subr.bf16.mxu1 %v892_v0  ;;  %673 = vmatprep.subr.bf16.mxu0 %v892_v0 }
  0x43   :  { %694 = vmatpush3.bf16.msra.mxu1 %v757_v12  ;;  %674 = vmatpush3.bf16.msra.mxu0 %v765_v18 }
  0x44   :  { %695 = vmatprep.subr.bf16.mxu1 %v892_v0  ;;  %675 = vmatprep.subr.bf16.mxu0 %v892_v0 }
  0x47   :  { %696 = vmatpush3.bf16.msra.mxu1 %v759_v14  ;;  %676 = vmatpush3.bf16.msra.mxu0 %v766_v19 }
  0x48   :  { %721 = vmatprep.subr.bf16.mxu1 %v892_v0  ;;  %701 = vmatprep.subr.bf16.mxu0 %v892_v0 }
  0x4a   :  { %698 = vmatmul.mubr.bf16.vlgmr.msra.gmra.mxu1 %v65_v17  ;;  %678 = vmatmul.mubr.bf16.vlgmr.msra.gmra.mxu0 %v65_v17 }
  0x4b   :  { %737 = vmatprep.mubr.msk.bf16.mxu1 %vm893_vm0, %v892_v0  ;;  %717 = vmatprep.mubr.msk.bf16.mxu0 %vm893_vm0, %v892_v0 }
  0x4c   :  { %702 = vmatpush3.bf16.msra.mxu0 %v767_v20  ;;  %722 = vmatpush3.bf16.msra.mxu1 %v768_v21 }
  0x4d   :  { %703 = vmatprep.subr.bf16.mxu0 %v892_v0  ;;  %723 = vmatprep.subr.bf16.mxu1 %v892_v0 }
  0x50   :  { %704 = vmatpush3.bf16.msra.mxu0 %v769_v22  ;;  %724 = vmatpush3.bf16.msra.mxu1 %v770_v23  ;;  %v604_v22 = vld [vmem:[%s1005_s2 + $0x1] ss:$0 sm:$0xff]  ;;  %s859_s2 = scalar_lea.vmem %s571_s17, 256 }
  0x51   :  { %705 = vmatprep.subr.bf16.mxu0 %v892_v0  ;;  %725 = vmatprep.subr.bf16.mxu1 %v892_v0  ;;  %p860_p1 = scmp.ne.s32.totalorder %s571_s17, %s859_s2  ;;  %p865_p3 = scmp.lt.s32.totalorder %s859_s2, %s859_s2 }
  0x53   :  { %p866_p4 = por %p865_p3, %p864_p2 }
  0x54   :  { %706 = vmatpush3.bf16.msra.mxu0 %v771_v24  ;;  %726 = vmatpush3.bf16.msra.mxu1 %v772_v25 }
  0x55   :  { %707 = vmatprep.subr.bf16.mxu0 %v892_v0  ;;  %727 = vmatprep.subr.bf16.mxu1 %v892_v0  ;;  %p867_p5 = pnand %p866_p4, %p860_p1 }
  0x58   :  { %708 = vmatpush3.bf16.msra.mxu0 %v773_v26  ;;  %728 = vmatpush3.bf16.msra.mxu1 %v774_v27 }
  0x59   :  { %709 = vmatprep.subr.bf16.mxu0 %v892_v0  ;;  %729 = vmatprep.subr.bf16.mxu1 %v892_v0 }
  0x5c   :  { %710 = vmatpush3.bf16.msra.mxu0 %v775_v28  ;;  %730 = vmatpush3.bf16.msra.mxu1 %v776_v29 }
  0x5d   :  { %711 = vmatprep.subr.bf16.mxu0 %v892_v0  ;;  %731 = vmatprep.subr.bf16.mxu1 %v892_v0 }
  0x60   :  { %712 = vmatpush3.bf16.msra.mxu0 %v777_v30  ;;  %732 = vmatpush3.bf16.msra.mxu1 %v778_v31 }
  0x61   :  { %713 = vmatprep.subr.bf16.mxu0 %v892_v0  ;;  %733 = vmatprep.subr.bf16.mxu1 %v892_v0 }
  0x64   :  { %714 = vmatpush3.bf16.msra.mxu0 %v779_v32  ;;  %734 = vmatpush3.bf16.msra.mxu1 %v780_v33 }
  0x65   :  { %715 = vmatprep.subr.bf16.mxu0 %v892_v0  ;;  %735 = vmatprep.subr.bf16.mxu1 %v892_v0 }
  0x68   :  { %716 = vmatpush3.bf16.msra.mxu0 %v781_v34  ;;  %736 = vmatpush3.bf16.msra.mxu1 %v782_v35 }
 0x10a   :  { %v283_v37 = vpop.f32.mrf.mxu1  ;;  %v171_v45 = vpop.f32.mrf.mxu0 }
 0x10b   :  { %v284_v38 = vadd.f32 %v592_v36, %v283_v37  ;;  %v172_v54 = vadd.f32 %v583_v53, %v171_v45 }
 0x10c   :  { %v699_v39 = vpop.f32.mrf.mxu1  ;;  %v679_v46 = vpop.f32.mrf.mxu0 }
 0x10d   :  { %v601_v40 = vmul.f32 -1.442695, %v284_v38  ;;  %v290_v58 = vmax.f32 %v172_v54, 0.0 }
 0x10e   :  { %v286_v41 = vpop.f32.mrf.mxu1  ;;  %v174_v47 = vpop.f32.mrf.mxu0 }
 0x10f   :  { %783 = vpow2.f32 %v601_v40  ;;  %v287_v42 = vadd.f32 %v592_v36, %v286_v41  ;;  %v175_v57 = vadd.f32 %v583_v53, %v174_v47 }
 0x110   :  { %v700_v43 = vpop.f32.mrf.mxu1  ;;  %v680_v48 = vpop.f32.mrf.mxu0 }
 0x111   :  { %v602_v44 = vmul.f32 -1.442695, %v287_v42  ;;  %v291_v61 = vmax.f32 %v175_v57, 0.0 }
 0x113   :  { %785 = vpow2.f32 %v602_v44 }
 0x11c   :  { %v784_v49 = vpop.eup %783 }
 0x11d   :  { %v298_v50 = vadd.f32 1.0, %v784_v49 }
 0x11f   :  { %787 = vrcp.f32 %v298_v50 }
 0x120   :  { %v786_v51 = vpop.eup %785 }
 0x121   :  { %v299_v52 = vadd.f32 1.0, %v786_v51 }
 0x123   :  { %789 = vrcp.f32 %v299_v52 }
 0x12c   :  { %v788_v55 = vpop.eup %787 }
 0x12d   :  { %v306_v56 = vsub.f32 1.0, %v788_v55  ;;  %v304_v63 = vmul.f32 %v788_v55, %v290_v58 }
 0x12f   :  { %v308_v60 = vmul.f32 %v306_v56, %v953_v15 }
 0x130   :  { %v790_v59 = vpop.eup %789 }
 0x131   :  { %v307_v62 = vsub.f32 1.0, %v790_v59  ;;  %v305_v0 = vmul.f32 %v790_v59, %v291_v61  ;;  %v310_v2 = vadd.f32 %v308_v60, %v304_v63 }
 0x133   :  { %v309_v1 = vmul.f32 %v307_v62, %v955_v16 }
 0x135   :  { %v311_v3 = vadd.f32 %v309_v1, %v305_v0 }
 0x137   :  { %v312_v4 = vpack.c.bf16 %v311_v3, %v310_v2 }
 0x139   :  { %718 = vmatmul.mubr.bf16.vlgmr.msra.gmra.mxu0 %v312_v4  ;;  %738 = vmatmul.mubr.bf16.vlgmr.msra.gmra.mxu1 %v312_v4 }
 0x1f9   :  { %v420_v6 = vpop.f32.mrf.mxu0  ;;  %v534_v7 = vpop.f32.mrf.mxu1 }
 0x1fa   :  { %v535_v8 = vadd.f32 %v614_v5, %v534_v7  ;;  %v421_v23 = vadd.f32 %v604_v22, %v420_v6 }
 0x1fb   :  { %v719_v9 = vpop.f32.mrf.mxu0  ;;  %v739_v10 = vpop.f32.mrf.mxu1 }
 0x1fc   :  { %v623_v11 = vmul.f32 -1.442695, %v535_v8  ;;  %v541_v25 = vmax.f32 %v421_v23, 0.0 }
 0x1fd   :  { %v423_v12 = vpop.f32.mrf.mxu0  ;;  %v537_v13 = vpop.f32.mrf.mxu1 }
 0x1fe   :  { %791 = vpow2.f32 %v623_v11  ;;  %v538_v14 = vadd.f32 %v614_v5, %v537_v13  ;;  %v424_v26 = vadd.f32 %v604_v22, %v423_v12 }
 0x1ff   :  { %v720_v15 = vpop.f32.mrf.mxu0  ;;  %v740_v16 = vpop.f32.mrf.mxu1 }
 0x200   :  { %v624_v17 = vmul.f32 -1.442695, %v538_v14  ;;  %v542_v31 = vmax.f32 %v424_v26, 0.0 }
 0x202   :  { %793 = vpow2.f32 %v624_v17 }
 0x20b   :  { %v792_v18 = vpop.eup %791 }
 0x20c   :  { %v549_v19 = vadd.f32 1.0, %v792_v18 }
 0x20e   :  { %795 = vrcp.f32 %v549_v19 }
 0x20f   :  { %v794_v20 = vpop.eup %793 }
 0x210   :  { %v550_v21 = vadd.f32 1.0, %v794_v20 }
 0x212   :  { %797 = vrcp.f32 %v550_v21 }
 0x21b   :  { %v796_v24 = vpop.eup %795 }
 0x21c   :  { %v557_v27 = vsub.f32 1.0, %v796_v24  ;;  %v555_v28 = vmul.f32 %v796_v24, %v541_v25 }
 0x21e   :  { %v559_v29 = vmul.f32 %v557_v27, %v310_v2 }
 0x21f   :  { %v798_v30 = vpop.eup %797 }
 0x220   :  { %v558_v32 = vsub.f32 1.0, %v798_v30  ;;  %v561_v33 = vadd.f32 %v559_v29, %v555_v28  ;;  %v556_v34 = vmul.f32 %v798_v30, %v542_v31 }
 0x222   :  { %v560_v35 = vmul.f32 %v558_v32, %v311_v3  ;;  %563 = vst [vmem:[#allocation8] sm:$0xff] %v561_v33 }
 0x224   :  { %v562_v36 = vadd.f32 %v560_v35, %v556_v34 }
 0x226   :  { %564 = vst [vmem:[#allocation8 + $0x8] sm:$0xff] %v562_v36 }
 0x227   :  { %870 = shalt.err (!%p867_p5)
}
 0x228   :  { %576 = dma.vmem_to_hbm [thread:$0]  %s571_s17, 256, %s1008_s5, [#allocation4], %s889_s28, %s889_s28, %s890_s29  }
 0x229   :  { %883 = dma.done.wait [#allocation4], 256  }
 0x22a   :  { %884 = vsyncadd [#allocation4], 4294967040 }
 0x22b   :  { %580 = vsyncpa [#allocation3], 1 }
 0x22c   :  { %581 = vsyncpa [#allocation6], 1 }
 0x22d   :  { %582 = vsyncpa [#allocation4], 1 }

</bundles_post_ra>
